<compile_context>
chip_gen: v6e
topology: v6e:2x2x1
jax: 0.10.0
libtpu: 0.0.40
codegen_flags: <defaults>
</compile_context>

<pallas_src>
import functools

import jax
import jax.numpy as jnp
from jax.experimental import pallas as pl
from jax.experimental.pallas import tpu as pltpu


def mlp_kernel(x_ref, w1_ref, b1_ref, w2_ref, b2_ref, o_ref, *, valid_out):
    # x_ref:  (tile_b, in_p)   compute dtype, resident across the hidden axis
    # w1_ref: (in_p, tile_h)   hidden chunk k of layer-1 weights
    # b1_ref: (1, tile_h)      f32 chunk of layer-1 bias
    # w2_ref: (tile_h, out_p)  hidden chunk k of layer-2 weights
    # b2_ref: (1, out_p)       f32 layer-2 bias (padded lanes are zero)
    # o_ref:  (tile_b, out_p)  f32 output tile, doubles as the logits accumulator
    k = pl.program_id(1)

    @pl.when(k == 0)
    def _():
        o_ref[...] = jnp.zeros_like(o_ref)

    # Layer 1 chunk: Linear + ReLU (bf16 MXU, f32 accumulate).
    h = jnp.dot(x_ref[...], w1_ref[...],
                preferred_element_type=jnp.float32) + b1_ref[...]
    h = jnp.maximum(h, 0.0).astype(w2_ref.dtype)

    # Layer 2 chunk: accumulate partial logits directly in the f32 output block.
    o_ref[...] += jnp.dot(h, w2_ref[...], preferred_element_type=jnp.float32)

    @pl.when(k == pl.num_programs(1) - 1)
    def _():
        logits = o_ref[...] + b2_ref[...]
        if valid_out < logits.shape[-1]:
            # Mask padded output lanes in f32 so they contribute nothing to the
            # LogSoftmax normalizer.
            lane = jax.lax.broadcasted_iota(jnp.int32, logits.shape, 1)
            logits = jnp.where(lane < valid_out, logits, -1e30)
        # Numerically stable LogSoftmax over the lane-dense last dim.
        m = jnp.max(logits, axis=-1, keepdims=True)
        z = logits - m
        lse = jnp.log(jnp.sum(jnp.exp(z), axis=-1, keepdims=True))
        o_ref[...] = z - lse


def _round_up(v, m):
    return ((v + m - 1) // m) * m


def _cdiv(a, b):
    return -(-a // b)


# Sublane packing (rows per vreg) by itemsize.
_SUBLANE = {4: 8, 2: 16, 1: 32}


def _vmem_cap_bytes():
    try:
        return int(pltpu.get_tpu_info().vmem_capacity_bytes)
    except Exception:
        return 64 << 20  # conservative (v7x per-TC VMEM)


def prepare_params(w1, b1, w2, b2, *, compute_dtype=jnp.bfloat16):
    """Pad/cast weights once (outside the per-call hot path).

    w1: (input_dim, hidden), b1: (hidden,), w2: (hidden, output), b2: (output,).
    """
    input_dim, hidden_dim = w1.shape
    output_dim = w2.shape[1]
    in_p = _round_up(input_dim, 128)
    hid_p = _round_up(hidden_dim, 128)
    out_p = _round_up(output_dim, 128)

    def pad2(a, rows, cols, dtype):
        a = a.astype(dtype)
        if a.shape == (rows, cols):
            return a
        return jnp.zeros((rows, cols), dtype).at[:a.shape[0], :a.shape[1]].set(a)

    return dict(
        w1=pad2(w1, in_p, hid_p, compute_dtype),
        b1=pad2(b1.reshape(1, -1), 1, hid_p, jnp.float32),
        w2=pad2(w2, hid_p, out_p, compute_dtype),
        b2=pad2(b2.reshape(1, -1), 1, out_p, jnp.float32),
        dims=(input_dim, hidden_dim, output_dim),
        compute_dtype=compute_dtype,
    )


def mlp_forward(x, params, *, tile_b=None, tile_h=None):
    """x: (B, input_dim). Returns f32 log-probabilities of shape (B, output_dim)."""
    input_dim, hidden_dim, output_dim = params["dims"]
    cdt = params["compute_dtype"]
    w1_p, b1_p, w2_p, b2_p = params["w1"], params["b1"], params["w2"], params["b2"]
    in_p, hid_p = w1_p.shape
    out_p = w2_p.shape[1]
    B = x.shape[0]

    itm = jnp.dtype(cdt).itemsize
    sub = _SUBLANE.get(itm, 8)

    cap = _vmem_cap_bytes()
    budget = int(cap * 0.6)  # headroom for compiler scratch / misc buffers

    # ---- choose tile_h (hidden chunk) -------------------------------------
    n_hid_chunks = hid_p // 128
    if tile_h is None:
        full_w_bytes = 2 * itm * (in_p * hid_p + hid_p * out_p)  # double-buffered
        if full_w_bytes <= budget // 2:
            # Weights fit VMEM: constant w1/w2 index maps -> fetched from HBM once.
            tile_h = hid_p
        else:
            # Largest 128-multiple divisor of hid_p whose w1/w2 blocks fit.
            tile_h = 128
            for d in range(1, n_hid_chunks + 1):
                if n_hid_chunks % d:
                    continue
                th = d * 128
                if 2 * itm * th * (in_p + out_p) <= budget // 2:
                    tile_h = th
    else:
        tile_h = min(_round_up(tile_h, 128), hid_p)
        while hid_p % tile_h:  # snap to a divisor of hid_p (no weight repadding)
            tile_h -= 128
        tile_h = max(tile_h, 128)
    # TODO(synk): for very large input_dim, tile the first contraction over
    # input features too (extra "arbitrary" grid axis + hidden-activation
    # scratch) instead of one (in_p, tile_h) block.

    # ---- choose tile_b (batch tile), minimizing padding waste ---------------
    fixed_bytes = 2 * itm * tile_h * (in_p + out_p) + 2 * 4 * (tile_h + out_p)
    per_row_bytes = 2 * itm * in_p + 2 * 4 * out_p
    if tile_b is None:
        # If weights are streamed per batch tile, use a bigger batch tile to
        # amortize weight HBM traffic.
        target_b = 256 if tile_h == hid_p else 512
        avail = max(budget - fixed_bytes, per_row_bytes * sub)
        cap_b = max(sub, (avail // per_row_bytes) // sub * sub)
        target_b = max(sub, min(target_b, cap_b, _round_up(B, sub)))
        n_steps = max(1, _cdiv(B, target_b))
        tile_b = _round_up(_cdiv(B, n_steps), sub)
    else:
        tile_b = max(sub, _round_up(tile_b, sub))
    b_p = _round_up(B, tile_b)

    # ---- VMEM limit: per-generation clamp ----------------------------------
    est = fixed_bytes + per_row_bytes * tile_b
    vmem_limit = int(min(max(est + (4 << 20), 32 << 20), cap - (8 << 20)))

    # ---- pad/cast the activations only if needed ----------------------------
    if x.shape == (b_p, in_p):
        x_p = x if x.dtype == cdt else x.astype(cdt)
    else:
        x_p = jnp.zeros((b_p, in_p), cdt).at[:B, :x.shape[1]].set(x.astype(cdt))

    grid = (b_p // tile_b, hid_p // tile_h)
    kernel = functools.partial(mlp_kernel, valid_out=output_dim)

    # TODO(synk): on v7x, switch the batch axis to pltpu.CORE_PARALLEL (2 TCs)
    # once weights are VMEM-resident; "parallel" is kept for portability here.
    out_padded = pl.pallas_call(
        kernel,
        out_shape=jax.ShapeDtypeStruct((b_p, out_p), jnp.float32),
        grid_spec=pltpu.PrefetchScalarGridSpec(
            num_scalar_prefetch=0,
            grid=grid,
            in_specs=[
                pl.BlockSpec((tile_b, in_p), lambda i, k: (i, 0)),
                pl.BlockSpec((in_p, tile_h), lambda i, k: (0, k)),
                pl.BlockSpec((1, tile_h), lambda i, k: (0, k)),
                pl.BlockSpec((tile_h, out_p), lambda i, k: (k, 0)),
                pl.BlockSpec((1, out_p), lambda i, k: (0, 0)),
            ],
            out_specs=pl.BlockSpec((tile_b, out_p), lambda i, k: (i, 0)),
        ),
        compiler_params=pltpu.CompilerParams(
            dimension_semantics=("parallel", "arbitrary"),
            vmem_limit_bytes=vmem_limit,
        ),
    )(x_p, w1_p, b1_p, w2_p, b2_p)

    return out_padded[:B, :output_dim]


def reference_forward_mixed(x, w1, b1, w2, b2, compute_dtype=jnp.bfloat16):
    """Pure-JAX reference mirroring the kernel's mixed-precision arithmetic."""
    xb = x.astype(compute_dtype)
    w1b = w1.astype(compute_dtype)
    w2b = w2.astype(compute_dtype)
    h = jnp.dot(xb, w1b, preferred_element_type=jnp.float32) + b1.astype(jnp.float32)
    h = jnp.maximum(h, 0.0).astype(compute_dtype)
    logits = jnp.dot(h, w2b, preferred_element_type=jnp.float32) + b2.astype(jnp.float32)
    return jax.nn.log_softmax(logits, axis=-1)


if __name__ == "__main__":
    # Small shapes consistent with MLP(input_dim, output_dim, hidden_dim).
    batch, input_dim, hidden_dim, output_dim = 32, 16, 32, 8

    key = jax.random.PRNGKey(0)
    kx, k1, kb1, k2, kb2 = jax.random.split(key, 5)

    x = jax.random.normal(kx, (batch, input_dim), dtype=jnp.float32)

    # PyTorch Linear stores weight as (out, in); we keep the transposed (in, out)
    # layout so the kernel computes x @ W.
    bound1 = 1.0 / (input_dim ** 0.5)
    w1 = jax.random.uniform(k1, (input_dim, hidden_dim), jnp.float32, -bound1, bound1)
    b1 = jax.random.uniform(kb1, (hidden_dim,), jnp.float32, -bound1, bound1)
    bound2 = 1.0 / (hidden_dim ** 0.5)
    w2 = jax.random.uniform(k2, (hidden_dim, output_dim), jnp.float32, -bound2, bound2)
    b2 = jax.random.uniform(kb2, (output_dim,), jnp.float32, -bound2, bound2)

    # Pad/cast weights once (outside the per-call hot path).
    params = prepare_params(w1, b1, w2, b2, compute_dtype=jnp.bfloat16)

    # tile_b=16 -> 2 batch grid steps: exercises pipelining / batch parallelism.
    out = mlp_forward(x, params, tile_b=16)
    out = jax.block_until_ready(out)

    ref = reference_forward_mixed(x, w1, b1, w2, b2, compute_dtype=jnp.bfloat16)
    assert out.shape == (batch, output_dim)
    assert out.dtype == jnp.float32
    assert jnp.allclose(out, ref, atol=5e-3, rtol=5e-3), "mismatch vs reference"

    print("KERNEL_OK")
</pallas_src>

<mosaic_0001>
module attributes {stable_mosaic.version = 11 : i64} {
  func.func @mlp_kernel(%arg0: i32, %arg1: i32, %arg2: memref<16x128xbf16, #tpu.memory_space<vmem>>, %arg3: memref<128x128xbf16, #tpu.memory_space<vmem>>, %arg4: memref<1x128xf32, #tpu.memory_space<vmem>>, %arg5: memref<128x128xbf16, #tpu.memory_space<vmem>>, %arg6: memref<1x128xf32, #tpu.memory_space<vmem>>, %arg7: memref<16x128xf32, #tpu.memory_space<vmem>>) attributes {dimension_semantics = [#tpu.dimension_semantics<parallel>, #tpu.dimension_semantics<arbitrary>], iteration_bounds = array<i64: 2, 1>, scalar_prefetch = 0 : i64, scratch_operands = 0 : i64, tpu.core_type = #tpu.core_type<tc>, window_params = [{transform_indices = @transform_0, window_bounds = array<i64: 16, 128>}, {transform_indices = @transform_1, window_bounds = array<i64: 128, 128>}, {transform_indices = @transform_2, window_bounds = array<i64: 1, 128>}, {transform_indices = @transform_3, window_bounds = array<i64: 128, 128>}, {pipeline_mode = #tpu.pipeline_mode<synchronous>, transform_indices = @transform_4, window_bounds = array<i64: 1, 128>}, {transform_indices = @transform_5, window_bounds = array<i64: 16, 128>}]} {
    %c0_i32 = arith.constant 0 : i32
    %0 = arith.cmpi eq, %arg1, %c0_i32 : i32
    %1 = arith.extui %0 : i1 to i32
    %c0_i32_0 = arith.constant 0 : i32
    %2 = arith.cmpi ne, %1, %c0_i32_0 : i32
    scf.if %2 {
      %cst_16 = arith.constant 0.000000e+00 : f32
      %20 = vector.broadcast %cst_16 : f32 to vector<16x128xf32>
      %c0_17 = arith.constant 0 : index
      %c0_18 = arith.constant 0 : index
      %21 = vector.load %arg7[%c0_17, %c0_18] : memref<16x128xf32, #tpu.memory_space<vmem>>, vector<16x128xf32>
      tpu.vector_store %arg7[%c0_17, %c0_18], %20 {strides = array<i32>} : memref<16x128xf32, #tpu.memory_space<vmem>>, vector<16x128xf32>,
    } else {
    }
    %c0 = arith.constant 0 : index
    %c0_1 = arith.constant 0 : index
    %3 = vector.load %arg2[%c0, %c0_1] : memref<16x128xbf16, #tpu.memory_space<vmem>>, vector<16x128xbf16>
    %c0_2 = arith.constant 0 : index
    %c0_3 = arith.constant 0 : index
    %4 = vector.load %arg3[%c0_2, %c0_3] : memref<128x128xbf16, #tpu.memory_space<vmem>>, vector<128x128xbf16>
    %cst = arith.constant dense<0.000000e+00> : vector<16x128xf32>
    %5 = tpu.matmul %3, %4, %cst {dimension_numbers = #tpu.dot_dimension_numbers<[1], [0], [0], [1], [0, 0, 1, 1], [], []>} : vector<16x128xbf16>, vector<128x128xbf16>, vector<16x128xf32> -> vector<16x128xf32>
    %c0_4 = arith.constant 0 : index
    %c0_5 = arith.constant 0 : index
    %6 = vector.load %arg4[%c0_4, %c0_5] : memref<1x128xf32, #tpu.memory_space<vmem>>, vector<1x128xf32>
    %7 = vector.broadcast %6 : vector<1x128xf32> to vector<16x128xf32>
    %8 = arith.addf %5, %7 : vector<16x128xf32>
    %cst_6 = arith.constant 0.000000e+00 : f32
    %9 = vector.broadcast %cst_6 : f32 to vector<16x128xf32>
    %10 = arith.maximumf %8, %9 : vector<16x128xf32>
    %11 = arith.truncf %10 : vector<16x128xf32> to vector<16x128xbf16>
    %c0_7 = arith.constant 0 : index
    %c0_8 = arith.constant 0 : index
    %12 = vector.load %arg7[%c0_7, %c0_8] : memref<16x128xf32, #tpu.memory_space<vmem>>, vector<16x128xf32>
    %c0_9 = arith.constant 0 : index
    %c0_10 = arith.constant 0 : index
    %13 = vector.load %arg5[%c0_9, %c0_10] : memref<128x128xbf16, #tpu.memory_space<vmem>>, vector<128x128xbf16>
    %cst_11 = arith.constant dense<0.000000e+00> : vector<16x128xf32>
    %14 = tpu.matmul %11, %13, %cst_11 {dimension_numbers = #tpu.dot_dimension_numbers<[1], [0], [0], [1], [0, 0, 1, 1], [], []>} : vector<16x128xbf16>, vector<128x128xbf16>, vector<16x128xf32> -> vector<16x128xf32>
    %15 = arith.addf %12, %14 : vector<16x128xf32>
    %c0_12 = arith.constant 0 : index
    %c0_13 = arith.constant 0 : index
    %16 = vector.load %arg7[%c0_12, %c0_13] : memref<16x128xf32, #tpu.memory_space<vmem>>, vector<16x128xf32>
    tpu.vector_store %arg7[%c0_12, %c0_13], %15 {strides = array<i32>} : memref<16x128xf32, #tpu.memory_space<vmem>>, vector<16x128xf32>,
    %c0_i32_14 = arith.constant 0 : i32
    %17 = arith.cmpi eq, %arg1, %c0_i32_14 : i32
    %18 = arith.extui %17 : i1 to i32
    %c0_i32_15 = arith.constant 0 : i32
    %19 = arith.cmpi ne, %18, %c0_i32_15 : i32
    scf.if %19 {
      %c0_16 = arith.constant 0 : index
      %c0_17 = arith.constant 0 : index
      %20 = vector.load %arg7[%c0_16, %c0_17] : memref<16x128xf32, #tpu.memory_space<vmem>>, vector<16x128xf32>
      %c0_18 = arith.constant 0 : index
      %c0_19 = arith.constant 0 : index
      %21 = vector.load %arg6[%c0_18, %c0_19] : memref<1x128xf32, #tpu.memory_space<vmem>>, vector<1x128xf32>
      %22 = vector.broadcast %21 : vector<1x128xf32> to vector<16x128xf32>
      %23 = arith.addf %20, %22 : vector<16x128xf32>
      %24 = tpu.iota {dimensions = array<i32: 1>} : vector<16x128xi32>
      %c8_i32 = arith.constant 8 : i32
      %25 = vector.broadcast %c8_i32 : i32 to vector<16x128xi32>
      %26 = arith.cmpi slt, %24, %25 : vector<16x128xi32>
      %cst_20 = arith.constant -1.000000e+30 : f32
      %27 = vector.broadcast %cst_20 : f32 to vector<16x128xf32>
      %28 = arith.select %26, %23, %27 : vector<16x128xi1>, vector<16x128xf32>
      %cst_21 = arith.constant dense<0xFF800000> : vector<16xf32>
      %29 = vector.multi_reduction <maximumf>, %28, %cst_21 [1] : vector<16x128xf32> to vector<16xf32>
      %30 = vector.shape_cast %29 : vector<16xf32> to vector<16x1xf32>
      %31 = vector.broadcast %30 : vector<16x1xf32> to vector<16x128xf32>
      %32 = arith.subf %28, %31 : vector<16x128xf32>
      %33 = math.exp %32 : vector<16x128xf32>
      %cst_22 = arith.constant dense<0.000000e+00> : vector<16xf32>
      %34 = vector.multi_reduction <add>, %33, %cst_22 [1] : vector<16x128xf32> to vector<16xf32>
      %35 = vector.shape_cast %34 : vector<16xf32> to vector<16x1xf32>
      %36 = math.log %35 : vector<16x1xf32>
      %37 = vector.broadcast %36 : vector<16x1xf32> to vector<16x128xf32>
      %38 = arith.subf %32, %37 : vector<16x128xf32>
      %c0_23 = arith.constant 0 : index
      %c0_24 = arith.constant 0 : index
      %39 = vector.load %arg7[%c0_23, %c0_24] : memref<16x128xf32, #tpu.memory_space<vmem>>, vector<16x128xf32>
      tpu.vector_store %arg7[%c0_23, %c0_24], %38 {strides = array<i32>} : memref<16x128xf32, #tpu.memory_space<vmem>>, vector<16x128xf32>,
    } else {
    }
    return
  }
  func.func @transform_0(%arg0: i32, %arg1: i32) -> (i32, i32) {
    %c0_i32 = arith.constant 0 : i32
    %c0_i32_0 = arith.constant 0 : i32
    return %arg0, %c0_i32 : i32, i32
  }
  func.func @transform_1(%arg0: i32, %arg1: i32) -> (i32, i32) {
    %c0_i32 = arith.constant 0 : i32
    %c0_i32_0 = arith.constant 0 : i32
    return %c0_i32, %arg1 : i32, i32
  }
  func.func @transform_2(%arg0: i32, %arg1: i32) -> (i32, i32) {
    %c0_i32 = arith.constant 0 : i32
    %c0_i32_0 = arith.constant 0 : i32
    return %c0_i32, %arg1 : i32, i32
  }
  func.func @transform_3(%arg0: i32, %arg1: i32) -> (i32, i32) {
    %c0_i32 = arith.constant 0 : i32
    %c0_i32_0 = arith.constant 0 : i32
    return %arg1, %c0_i32 : i32, i32
  }
  func.func @transform_4(%arg0: i32, %arg1: i32) -> (i32, i32) {
    %c0_i32 = arith.constant 0 : i32
    %c0_i32_0 = arith.constant 0 : i32
    %c0_i32_1 = arith.constant 0 : i32
    return %c0_i32, %c0_i32_0 : i32, i32
  }
  func.func @transform_5(%arg0: i32, %arg1: i32) -> (i32, i32) {
    %c0_i32 = arith.constant 0 : i32
    %c0_i32_0 = arith.constant 0 : i32
    return %arg0, %c0_i32 : i32, i32
  }
}

</mosaic_0001>

<bundles_post_ra>
// kernel: tpu_custom_call.1
= control target key start
LH: loop header
LB: loop body
LE: loop exit
PB: predicated region body
PF: predicated region fallthrough
CT: control target
= control target key end

     0   :  { %s1354_s0 = inlined_call_operand.hbm [shape: bf16[32,128], index: 0, kind: input, shape index: {}]   ;;  %s1355_s1 = inlined_call_operand.hbm [shape: bf16[128,128], index: 1, kind: input, shape index: {}]   ;;  %s1356_s2 = inlined_call_operand.vmem [shape: f32[1,128], index: 2, kind: input, shape index: {}]   ;;  %s1357_s3 = inlined_call_operand.hbm [shape: bf16[128,128], index: 3, kind: input, shape index: {}]   ;;  %s1358_s4 = inlined_call_operand.vmem [shape: f32[1,128], index: 4, kind: input, shape index: {}]   ;;  %s1359_s5 = inlined_call_operand.hbm [shape: f32[32,128], index: 5, kind: output, shape index: {}]  }
   0x1   :  { %1362 = sst [smem:[#allocation12_spill]] %s1355_s1 }
   0x2   :  { %10 = vsyncpa [#allocation3], 0 }
   0x3   :  { %12 = vsyncpa [#allocation3 + $0x1], 0 }
   0x4   :  { %13 = vsyncpa [#allocation6], 0 }
   0x5   :  { %14 = vsyncpa [#allocation4], 0 }
   0x6   :  { %16 = vsyncpa [#allocation4 + $0x1], 0  ;;  %s1147_s18 = smov 0   ;;  %s1149_s19 = smov 0  }
   0x7   :  { %s1151_s20 = smov 0   ;;  %s1153_s21 = smov 0  }
   0x8   :  { %s1155_s22 = smov 0   ;;  %s1157_s23 = smov 0  }
   0x9 LB: > { %s728_s24 = sadd.s32 4294967295, %s1105_s23   ;;  %s729_s25 = sadd.s32 4294967294, %s1105_s23   ;;  %s1105_s23 = sphi %s1157_s23, %s22_s23   ;;  %s1101_s22 = sphi %s1155_s22, %s1380_s22   ;;  %s1097_s21 = sphi %s1153_s21, %s1379_s21   ;;  %s1093_s20 = sphi %s1151_s20, %s1378_s20   ;;  %s1089_s19 = sphi %s1149_s19, %s1377_s19   ;;  %s1085_s18 = sphi %s1147_s18, %s1376_s18  }
   0xa   : > { %p54_p0 = scmp.ne.s32.totalorder %s1089_s19, %s1085_s18  ;;  %p1181_p1 = scmp.eq.s32.totalorder %s728_s24, 0 }
   0xb   : > { %p1185_p2 = scmp.eq.s32.totalorder %s728_s24, 1  ;;  %p183_p3 = scmp.eq.s32.totalorder %s729_s25, 1 }
   0xc   : > { %p1191_p4 = por %p1181_p1, %p54_p0  ;;  %p730_p5 = scmp.ge.s32.totalorder %s1105_s23, 1 }
   0xd   : > { %p1196_p6 = por %p183_p3, %p54_p0  ;;  %p190_p7 = scmp.lt.s32.totalorder %s1105_s23, 3 }
   0xe   : > { %s1107_s6 = smov [#allocation5]   ;;  %s1108_s9 = smov [#allocation7]  }
   0xf   : > { %s1366_s29 = scalar_select %p1196_p6, 1, 0 }
  0x10   : > { %p1201_p8 = pnand %p730_p5, %p190_p7  ;;  %s204_s7 = sshll.u32 %s1107_s6, 4  ;;  %s205_s7 = int_to_ptr.vmem [resolvable:$true] %s204_s7 }
  0x11   : > { %s226_s10 = sshll.u32 %s1108_s9, 4  ;;  %s952_s11 = scalar_lea.vmem %s205_s7, 1024  ;;  %s227_s10 = int_to_ptr.vmem [resolvable:$true] %s226_s10 }
  0x12   : > { %p839_p9 = pneg %p1201_p8  ;;  %p953_p13 = scmp.ne.s32.totalorder %s205_s7, %s952_s11 }
  0x13   : > { %p960_p5 = scmp.lt.s32.totalorder %s205_s7, %s205_s7  ;;  %p961_p7 = scmp.lt.s32.totalorder %s952_s11, %s952_s11 }
  0x14   : > { %p1210_p11 = pnand %p839_p9, %p1181_p1 }
  0x15   : > { %p962_p10 = por %p961_p7, %p960_p5 }
  0x16   : > { %p943_p12 = pneg %p1210_p11 }
  0x18   : > { %p955_p0 = pnand %p953_p13, %p943_p12 }
  0x1a   : > { %p956_p3 = pneg %p955_p0 }
  0x1c   : > { %p963_p9 = pnand %p962_p10, %p956_p3 }
  0x1e   : > { %966 = shalt.err (!%p963_p9)
}
  0x1f   : > { %s1360_s12 = smov 64   ;;  %s1361_s13 = smov 4  }
  0x20   : > { %s1369_s1 = sld [smem:[#allocation12_spill]]  ;;  %s978_s16 = scalar_lea.vmem %s227_s10, 1024 }
  0x21   : > { %p979_p13 = scmp.ne.s32.totalorder %s227_s10, %s978_s16  ;;  %p986_p10 = scmp.lt.s32.totalorder %s227_s10, %s227_s10 }
  0x22   : > { %p987_p3 = scmp.lt.s32.totalorder %s978_s16, %s978_s16 }
  0x23   : > { %p981_p0 = pnand %p979_p13, %p943_p12 }
  0x24   : > { %p988_p7 = por %p987_p3, %p986_p10 }
  0x25   : > { %p982_p5 = pneg %p981_p0 }
  0x26   : > { %842 = dma.hbm_to_vmem [thread:$0]  (!%p1210_p11), %s1369_s1, 1024, %s205_s7, [#allocation6], %s1360_s12, %s1360_s12, %s1361_s13  }
  0x27   : > { %p989_p9 = pnand %p988_p7, %p982_p5 }
  0x29   : > { %992 = shalt.err (!%p989_p9)
}
  0x2a   : > { %845 = dma.hbm_to_vmem [thread:$0]  (!%p1210_p11), %s1357_s3, 1024, %s227_s10, [#allocation6], %s1360_s12, %s1360_s12, %s1361_s13  }
  0x2b   : > { %s34_s25 = sadd.s32 1, %s1101_s22  ;;  %s41_s6 = sadd.s32 1, %s1093_s20 }
  0x2c   : > { %p36_p12 = scmp.ge.s32.totalorder %s34_s25, 2  ;;  %p48_p13 = scmp.ne.s32.totalorder %s1093_s20, %s1089_s19 }
  0x2d   : > { %p49_p0 = scmp.eq.s32.totalorder %s1105_s23, 0  ;;  %p856_p5 = scmp.lt.s32.totalorder %s1105_s23, 2 }
  0x2e   : > { %s1382_s25 = smov (%p36_p12, %s34_s25), 0  ;;  %p1248_p3 = por %p1185_p2, %p48_p13 }
  0x2f   : > { %p50_p10 = por %p49_p0, %p48_p13  ;;  %s38_s8 = ssub.s32 %s1101_s22, %s1382_s25 }
  0x30   : > { %s243_s9 = sand.u32 1, %s1093_s20   ;;  %p39_p7 = scmp.eq.s32.totalorder %s38_s8, 0 }
  0x31   : > { %s735_s10 = sshll.u32 %s243_s9, 3  ;;  %s767_s11 = sshll.u32 %s1101_s22, 7 }
  0x32   : > { %s1257_s14 = scalar_select %p39_p7, %s1093_s20, %s41_s6  }
  0x33   : > { %s253_s17 = scalar_lea.hbm %s1354_s0, %s767_s11  ;;  %s247_s24 = scalar_lea.vmem [#allocation2], %s735_s10 }
  0x34   : > { %s254_s12 = sshll.u32 %s247_s24, 4  ;;  %p1264_p11 = pnand %p856_p5, %p50_p10  ;;  %s255_s12 = int_to_ptr.vmem [resolvable:$true] %s254_s12 }
  0x35   : > { %s244_s13 = scalar_lea.sflag [#allocation3], %s243_s9  ;;  %s1006_s8 = scalar_lea.vmem %s255_s12, 128 }
  0x36   : > { %p995_p2 = pneg %p1264_p11  ;;  %p1007_p9 = scmp.ne.s32.totalorder %s255_s12, %s1006_s8 }
  0x37   : > { %s1111_s6 = smov [#allocation2]  }
  0x38   : > { %p1009_p12 = pnand %p1007_p9, %p995_p2  ;;  %s1011_s1 = sshll.u32 %s1111_s6, 4  ;;  %s1012_s1 = int_to_ptr.vmem [resolvable:$false] %s1011_s1 }
  0x39   : > { %s1013_s11 = scalar_lea.vmem %s1012_s1, 256  ;;  %p1014_p0 = scmp.lt.s32.totalorder %s255_s12, %s1012_s1 }
  0x3a   : > { %p1010_p13 = pneg %p1009_p12  ;;  %p1015_p7 = scmp.lt.s32.totalorder %s1013_s11, %s1006_s8 }
  0x3c   : > { %p1016_p6 = por %p1015_p7, %p1014_p0 }
  0x3e   : > { %p1017_p5 = pnand %p1016_p6, %p1010_p13 }
  0x40   : > { %1020 = shalt.err (!%p1017_p5)
}
  0x41   : > { %s1372_s10 = smov 4   ;;  %s1373_s15 = smov 64  }
  0x42   : > { %849 = dma.hbm_to_vmem [thread:$0]  (!%p1264_p11), %s253_s17, 128, %s255_s12, %s244_s13, %s1373_s15, %s1373_s15, %s1372_s10  }
  0x43   : > { %266 = sbr.rel (%p1201_p8) target bundleno = 838 (0x346), region = 40  ;;  %s1278_s9 = sand.u32 (!%p1201_p8), 1, %s1089_s19  }
  0x44   : > { %s739_s1 = sshll.u32 (!%p1201_p8), %s1278_s9, 3  ;;  %s269_s16 = scalar_lea.sflag (!%p1201_p8), [#allocation3], %s1278_s9 }
  0x45   : > { %s1282_s24 = scalar_lea.vmem (!%p1201_p8), [#allocation2], %s739_s1 }
  0x48   : > { %1072 = dma.done.wait (%p1191_p4), %s269_s16, 128  }
  0x49   : > { %1074 = vsyncadd (%p1191_p4), %s269_s16, 4294967168 }
  0x4a   : > { %1076 = dma.done.wait (%p1181_p1), [#allocation6], 2048  }
  0x4b   : > { %1078 = vsyncadd (%p1181_p1), [#allocation6], 4294965248  ;;  %v1112_v0 = vmov 0.0   ;;  %vm1113_vm0 = vmmov 0   ;;  %v916_v1 = vld [vmem:[#allocation5 + $0x38] sm:$0xff]   ;;  %v917_v2 = vld [vmem:[#allocation5 + $0x30] sm:$0xff]   ;;  %v571_v28 = vlaneseq }
  0x4c   : > { %787 = vmatprep.subr.bf16.mxu0 %v1112_v0  ;;  %803 = vmatprep.mubr.msk.bf16.mxu0 %vm1113_vm0, %v1112_v0  ;;  %v918_v3 = vld [vmem:[#allocation5 + $0x28] sm:$0xff]   ;;  %v925_v4 = vld [vmem:[#allocation7 + $0x38] sm:$0xff]   ;;  %v919_v5 = vld [vmem:[#allocation5 + $0x20] sm:$0xff]   ;;  %s742_s13 = sshll.u32 %s1278_s9, 4  ;;  %s768_s17 = sshll.u32 %s1097_s21, 8 }
  0x4d   : > { %807 = vmatprep.subr.bf16.mxu1 %v1112_v0  ;;  %823 = vmatprep.mubr.msk.bf16.mxu1 %vm1113_vm0, %v1112_v0  ;;  %v926_v6 = vld [vmem:[#allocation7 + $0x30] sm:$0xff]   ;;  %v920_v7 = vld [vmem:[#allocation5 + $0x18] sm:$0xff]   ;;  %v927_v8 = vld [vmem:[#allocation7 + $0x28] sm:$0xff]   ;;  %v572_v29 = vand.u32 127, %v571_v28  ;;  %s309_s27 = scalar_lea.vmem [#allocation8], %s742_s13  ;;  %s1304_s10 = scalar_lea.hbm %s1359_s5, %s768_s17 }
  0x4e   : > { %788 = vmatpush3.bf16.msra.mxu0 %v916_v1  ;;  %808 = vmatpush3.bf16.msra.mxu1 %v925_v4  ;;  %v921_v9 = vld [vmem:[#allocation5 + $0x10] sm:$0xff]   ;;  %v928_v10 = vld [vmem:[#allocation7 + $0x20] sm:$0xff]   ;;  %v922_v11 = vld [vmem:[#allocation5 + $0x8] sm:$0xff]   ;;  %s612_s8 = sshll.u32 %s309_s27, 4  ;;  %s599_s15 = scalar_lea.sflag [#allocation4], %s1278_s9  ;;  %s1306_s8 = int_to_ptr.vmem [resolvable:$true] %s612_s8 }
  0x4f   : > { %789 = vmatprep.subr.bf16.mxu0 %v1112_v0  ;;  %809 = vmatprep.subr.bf16.mxu1 %v1112_v0  ;;  %v929_v12 = vld [vmem:[#allocation7 + $0x18] sm:$0xff]   ;;  %v923_v13 = vld [vmem:[#allocation5] sm:$0xff]   ;;  %v930_v15 = vld [vmem:[#allocation7 + $0x10] sm:$0xff]   ;;  %vm573_vm1 = vcmp.lt.s32.totalorder %v572_v29, 8  ;;  %s1021_s1 = scalar_lea.vmem %s1306_s8, 256  ;;  %s1114_s21 = smov [#allocation8]  }
  0x50   : > { %v924_v14 = vld [vmem:[%s1282_s24] sm:$0xff]   ;;  %v931_v16 = vld [vmem:[#allocation7 + $0x8] sm:$0xff]   ;;  %v932_v17 = vld [vmem:[#allocation7] sm:$0xff]   ;;  %p1022_p1 = scmp.ne.s32.totalorder %s1306_s8, %s1021_s1  ;;  %s1025_s16 = sshll.u32 %s1114_s21, 4  ;;  %s1026_s16 = int_to_ptr.vmem [resolvable:$false] %s1025_s16 }
  0x51   : > { %v743_v18 = vld [vmem:[%s1356_s2] ss:$0 sm:$0xff]  ;;  %s1027_s24 = scalar_lea.vmem %s1026_s16, 512  ;;  %p1028_p8 = scmp.lt.s32.totalorder %s1306_s8, %s1026_s16 }
  0x52   : > { %790 = vmatpush3.bf16.msra.mxu0 %v917_v2  ;;  %810 = vmatpush3.bf16.msra.mxu1 %v926_v6  ;;  %v761_v31 = vld [vmem:[%s1358_s4] ss:$0 sm:$0xff]  ;;  %p1023_p4 = pnand %p1022_p1, %p1248_p3  ;;  %p1029_p10 = scmp.lt.s32.totalorder %s1027_s24, %s1021_s1 }
  0x53   : > { %791 = vmatprep.subr.bf16.mxu0 %v1112_v0  ;;  %811 = vmatprep.subr.bf16.mxu1 %v1112_v0 }
  0x54   : > { %p1024_p6 = pneg %p1023_p4  ;;  %p1030_p11 = por %p1029_p10, %p1028_p8 }
  0x56   : > { %792 = vmatpush3.bf16.msra.mxu0 %v918_v3  ;;  %812 = vmatpush3.bf16.msra.mxu1 %v927_v8  ;;  %p1031_p2 = pnand %p1030_p11, %p1024_p6 }
  0x57   : > { %793 = vmatprep.subr.bf16.mxu0 %v1112_v0  ;;  %813 = vmatprep.subr.bf16.mxu1 %v1112_v0 }
  0x5a   : > { %794 = vmatpush3.bf16.msra.mxu0 %v919_v5  ;;  %814 = vmatpush3.bf16.msra.mxu1 %v928_v10 }
  0x5b   : > { %795 = vmatprep.subr.bf16.mxu0 %v1112_v0  ;;  %815 = vmatprep.subr.bf16.mxu1 %v1112_v0 }
  0x5e   : > { %796 = vmatpush3.bf16.msra.mxu0 %v920_v7  ;;  %816 = vmatpush3.bf16.msra.mxu1 %v929_v12 }
  0x5f   : > { %797 = vmatprep.subr.bf16.mxu0 %v1112_v0  ;;  %817 = vmatprep.subr.bf16.mxu1 %v1112_v0 }
  0x62   : > { %798 = vmatpush3.bf16.msra.mxu0 %v921_v9  ;;  %818 = vmatpush3.bf16.msra.mxu1 %v930_v15 }
  0x63   : > { %799 = vmatprep.subr.bf16.mxu0 %v1112_v0  ;;  %819 = vmatprep.subr.bf16.mxu1 %v1112_v0 }
  0x66   : > { %800 = vmatpush3.bf16.msra.mxu0 %v922_v11  ;;  %820 = vmatpush3.bf16.msra.mxu1 %v931_v16 }
  0x67   : > { %801 = vmatprep.subr.bf16.mxu0 %v1112_v0  ;;  %821 = vmatprep.subr.bf16.mxu1 %v1112_v0 }
  0x6a   : > { %802 = vmatpush3.bf16.msra.mxu0 %v923_v13  ;;  %822 = vmatpush3.bf16.msra.mxu1 %v932_v17 }
  0x6d   : > { %804 = vmatmul.mubr.bf16.vlgmr.msra.gmra.mxu0 %v924_v14 }
 0x12d   : > { %v436_v19 = vpop.f32.mrf.mxu0 }
 0x12e   : > { %v437_v21 = vadd.f32 %v743_v18, %v436_v19 }
 0x12f   : > { %v805_v20 = vpop.f32.mrf.mxu0 }
 0x130   : > { %v443_v25 = vmax.f32 %v437_v21, 0.0 }
 0x131   : > { %v439_v22 = vpop.f32.mrf.mxu0 }
 0x132   : > { %v440_v23 = vadd.f32 %v743_v18, %v439_v22 }
 0x133   : > { %v806_v24 = vpop.f32.mrf.mxu0 }
 0x134   : > { %v444_v26 = vmax.f32 %v440_v23, 0.0 }
 0x136   : > { %v445_v27 = vpack.c.bf16 %v444_v26, %v443_v25 }
 0x138   : > { %824 = vmatmul.mubr.bf16.vlgmr.msra.gmra.mxu1 %v445_v27 }
 0x1f8   : > { %v546_v30 = vpop.f32.mrf.mxu1 }
 0x1f9   : > { %v569_v33 = vadd.f32 %v761_v31, %v546_v30 }
 0x1fa   : > { %v825_v32 = vpop.f32.mrf.mxu1 }
 0x1fb   : > { %v574_v35 = vsel %vm573_vm1, %v569_v33, -1e+30 }
 0x1fc   : > { %v549_v34 = vpop.f32.mrf.mxu1  ;;  %576 = vmax.xlane.f32.xlu0 %v574_v35 }
 0x1fd   : > { %v570_v37 = vadd.f32 %v761_v31, %v549_v34 }
 0x1fe   : > { %v826_v36 = vpop.f32.mrf.mxu1 }
 0x1ff   : > { %v575_v38 = vsel %vm573_vm1, %v570_v37, -1e+30 }
 0x200   : > { %578 = vmax.xlane.f32.xlu0 %v575_v38 }
 0x285   : > { %v577_v39 = vpop.xlane.xlu0 %576 }
 0x286   : > { %v580_v40 = vsub.f32 %v574_v35, %v577_v39 }
 0x288   : > { %v582_v41 = vmul.f32 1.442695, %v580_v40 }
 0x289   : > { %v579_v42 = vpop.xlane.xlu0 %578 }
 0x28a   : > { %v581_v43 = vsub.f32 %v575_v38, %v579_v42  ;;  %933 = vpow2.f32 %v582_v41 }
 0x28c   : > { %v584_v44 = vmul.f32 1.442695, %v581_v43 }
 0x28e   : > { %935 = vpow2.f32 %v584_v44 }
 0x297   : > { %v934_v45 = vpop.eup %933 }
 0x298   : > { %586 = vadd.xlane.f32.xlu1 %v934_v45 }
 0x29b   : > { %v936_v46 = vpop.eup %935 }
 0x29c   : > { %588 = vadd.xlane.f32.xlu1 %v936_v46 }
 0x321   : > { %v587_v47 = vpop.xlane.xlu1 %586 }
 0x322   : > { %937 = vlog2.f32 %v587_v47 }
 0x325   : > { %v589_v48 = vpop.xlane.xlu1 %588 }
 0x326   : > { %939 = vlog2.f32 %v589_v48 }
 0x32f   : > { %v938_v49 = vpop.eup %937 }
 0x330   : > { %v591_v50 = vmul.f32 0.6931472, %v938_v49 }
 0x332   : > { %v594_v51 = vsub.f32 %v580_v40, %v591_v50 }
 0x333   : > { %v940_v52 = vpop.eup %939 }
 0x334   : > { %596 = vst [vmem:[%s309_s27] sm:$0xff] %v594_v51  ;;  %v593_v53 = vmul.f32 0.6931472, %v940_v52 }
 0x336   : > { %v595_v54 = vsub.f32 %v581_v43, %v593_v53 }
 0x338   : > { %597 = vst [vmem:[%s309_s27 + $0x8] sm:$0xff] %v595_v54 }
 0x339   : > { %1034 = shalt.err (!%p1031_p2)
}
 0x33a   : > { %s1035_s26 = scalar_lea.hbm %s1304_s10, 256  ;;  %s1039_s12 = scalar_lea.hbm %s1359_s5, 512 }
 0x33b   : > { %p1036_p9 = scmp.ne.s32.totalorder %s1304_s10, %s1035_s26  ;;  %p1040_p0 = scmp.lt.s32.totalorder %s1304_s10, %s1359_s5 }
 0x33c   : > { %p1041_p7 = scmp.lt.s32.totalorder %s1039_s12, %s1035_s26 }
 0x33d   : > { %p1037_p12 = pnand %p1036_p9, %p1248_p3 }
 0x33e   : > { %p1042_p5 = por %p1041_p7, %p1040_p0 }
 0x33f   : > { %p1038_p13 = pneg %p1037_p12 }
 0x341   : > { %p1043_p1 = pnand %p1042_p5, %p1038_p13 }
 0x343   : > { %1046 = shalt.err (!%p1043_p1)
}
 0x344   : > { %s1115_s27 = smov 128   ;;  %s1116_s6 = smov 8  }
 0x345   : > { %837 = dma.vmem_to_hbm [thread:$0]  (%p1248_p3), %s1306_s8, 256, %s1304_s10, %s599_s15, %s1115_s27, %s1115_s27, %s1116_s6  }
 0x346 PF: > { %s627_s11 = sand.u32 1, %s1085_s18   ;;  %p1374_p4 = scmp.ne.s32.totalorder %s1366_s29, 0 }
 0x347   : > { %p1375_p6 = scmp.ge.s32.totalorder %s1105_s23, 2  ;;  %s628_s1 = scalar_lea.sflag [#allocation4], %s627_s11 }
 0x349   : > { %p851_p8 = pnand %p1375_p6, %p1374_p4 }
 0x34b   : > { %p852_p10 = pneg %p851_p8 }
 0x34d   : > { %1080 = dma.done.wait (%p852_p10), %s628_s1, 256  }
 0x34e   : > { %1082 = vsyncadd (%p852_p10), %s628_s1, 4294967040  ;;  %s22_s23 = sadd.s32 1, %s1105_s23   ;;  %s1376_s18 = smov %s1089_s19 }
 0x34f   : > { %p19_p11 = scmp.ge.s32.totalorder %s22_s23, 4   ;;  %s1377_s19 = smov %s1093_s20 }
 0x350   : > { %s1378_s20 = smov %s1257_s14  ;;  %s1379_s21 = smov %s1101_s22 }
 0x351   : > { %s1380_s22 = smov %s1382_s25  ;;  %21 = sbr.rel (!%p19_p11) target bundleno = 9 (0x9), region = 106 }
 0x356   :  { %633 = vsyncpa [#allocation3], 1 }
 0x357   :  { %635 = vsyncpa [#allocation3 + $0x1], 1 }
 0x358   :  { %636 = vsyncpa [#allocation6], 1 }
 0x359   :  { %637 = vsyncpa [#allocation4], 1 }
 0x35a   :  { %639 = vsyncpa [#allocation4 + $0x1], 1 }

</bundles_post_ra>
